<compile_context>
chip_gen: v5e
topology: v5e:2x2
jax: 0.10.0
libtpu: 0.0.40
codegen_flags: <defaults>
</compile_context>

<pallas_src>
import jax
import jax.numpy as jnp
from jax.experimental import pallas as pl
from jax.experimental.pallas import tpu as pltpu


def _round_up(x, m):
    return (x + m - 1) // m * m


def _visual_encoder_kernel(app_ref, mot_ref, wa_ref, wm_ref, b_ref, out_ref):
    """Fused dual-linear producing one lane-dense output tile.

    app_ref: [TM, a_in]      mot_ref: [TM, m_in]
    wa_ref:  [a_in, N_pad]   wm_ref:  [m_in, N_pad]   (pre-packed, disjoint cols)
    b_ref:   [1, N_pad]      (f32, packed)
    out_ref: [TM, N_pad]
    """
    acc = jnp.dot(app_ref[...], wa_ref[...], preferred_element_type=jnp.float32)
    acc = acc + jnp.dot(mot_ref[...], wm_ref[...],
                        preferred_element_type=jnp.float32)
    acc = acc + b_ref[...]
    out_ref[...] = acc.astype(out_ref.dtype)   # single full-width unmasked store


def pack_visual_encoder_params(w_app, b_app, w_mot, b_mot, compute_dtype=None):
    """One-time packing (do this once, outside the per-call forward path).

    w_app: [a_out, a_in] (PyTorch layout), b_app: [a_out]
    w_mot: [m_out, m_in],                  b_mot: [m_out]
    Returns (wa_packed, wm_packed, b_packed, n_out).
    """
    a_out, a_in = w_app.shape
    m_out, m_in = w_mot.shape
    n_out = a_out + m_out
    n_pad = _round_up(n_out, 128)
    dt = compute_dtype if compute_dtype is not None else w_app.dtype

    wa_packed = jnp.zeros((a_in, n_pad), dt).at[:, :a_out].set(
        w_app.T.astype(dt))
    wm_packed = jnp.zeros((m_in, n_pad), dt).at[:, a_out:n_out].set(
        w_mot.T.astype(dt))
    b_packed = jnp.zeros((1, n_pad), jnp.float32)
    b_packed = b_packed.at[0, :a_out].set(b_app.astype(jnp.float32))
    b_packed = b_packed.at[0, a_out:n_out].set(b_mot.astype(jnp.float32))
    return wa_packed, wm_packed, b_packed, n_out


def visual_encoder_forward(app_feats, mot_feats,
                           wa_packed, wm_packed, b_packed, n_out):
    """app_feats: [B, T, a_in], mot_feats: [B, T, m_in]
       wa_packed/wm_packed/b_packed from pack_visual_encoder_params.
       returns [B, T, n_out]  (n_out = a_out + m_out)
    """
    B, T, a_in = app_feats.shape
    _, _, m_in = mot_feats.shape
    n_pad = wa_packed.shape[1]
    M = B * T

    # Row tile: big enough to hide per-step overhead, multiple of 8 sublanes.
    TM = min(512, _round_up(max(M, 1), 8))
    M_pad = _round_up(M, TM)

    app2d = app_feats.reshape(M, a_in)
    mot2d = mot_feats.reshape(M, m_in)
    if M_pad != M:
        app2d = jnp.pad(app2d, ((0, M_pad - M), (0, 0)))
        mot2d = jnp.pad(mot2d, ((0, M_pad - M), (0, 0)))

    out_dtype = app_feats.dtype
    itemsize = jnp.dtype(out_dtype).itemsize
    w_itemsize = jnp.dtype(wa_packed.dtype).itemsize
    cost = pl.CostEstimate(
        flops=2 * M_pad * (a_in + m_in) * n_pad,
        transcendentals=0,
        bytes_accessed=(M_pad * (a_in + m_in) * itemsize
                        + (a_in + m_in) * n_pad * w_itemsize
                        + n_pad * 4
                        + M_pad * n_pad * itemsize),
    )

    out2d = pl.pallas_call(
        _visual_encoder_kernel,
        out_shape=jax.ShapeDtypeStruct((M_pad, n_pad), out_dtype),
        grid=(M_pad // TM,),
        in_specs=[
            pl.BlockSpec((TM, a_in), lambda i: (i, 0)),      # row-tiled
            pl.BlockSpec((TM, m_in), lambda i: (i, 0)),      # row-tiled
            pl.BlockSpec((a_in, n_pad), lambda i: (0, 0)),   # VMEM-resident
            pl.BlockSpec((m_in, n_pad), lambda i: (0, 0)),   # VMEM-resident
            pl.BlockSpec((1, n_pad), lambda i: (0, 0)),      # VMEM-resident
        ],
        out_specs=pl.BlockSpec((TM, n_pad), lambda i: (i, 0)),
        compiler_params=pltpu.CompilerParams(
            dimension_semantics=("parallel",)),
        cost_estimate=cost,
    )(app2d, mot2d, wa_packed, wm_packed, b_packed)

    return out2d[:M, :n_out].reshape(B, T, n_out)


if __name__ == "__main__":
    # Small shapes consistent with the module's forward.
    B, T = 2, 8
    app_input_size, mot_input_size = 32, 32
    app_output_size, mot_output_size = 16, 16

    key = jax.random.PRNGKey(0)
    k1, k2, k3, k4, k5, k6 = jax.random.split(key, 6)

    app_feats = jax.random.normal(k1, (B, T, app_input_size), dtype=jnp.float32)
    mot_feats = jax.random.normal(k2, (B, T, mot_input_size), dtype=jnp.float32)

    # Synthetic nn.Linear parameters (PyTorch layout: [out, in] / [out]).
    w_app = jax.random.normal(k3, (app_output_size, app_input_size),
                              dtype=jnp.float32) * 0.05
    b_app = jax.random.normal(k4, (app_output_size,), dtype=jnp.float32) * 0.05
    w_mot = jax.random.normal(k5, (mot_output_size, mot_input_size),
                              dtype=jnp.float32) * 0.05
    b_mot = jax.random.normal(k6, (mot_output_size,), dtype=jnp.float32) * 0.05

    # One-time weight packing (kept outside the per-call forward path).
    wa_p, wm_p, b_p, n_out = pack_visual_encoder_params(w_app, b_app,
                                                        w_mot, b_mot)

    out = visual_encoder_forward(app_feats, mot_feats, wa_p, wm_p, b_p, n_out)
    out = jax.block_until_ready(out)

    # Reference in plain JAX (same math as the torch forward).
    ref = jnp.concatenate(
        [app_feats @ w_app.T + b_app, mot_feats @ w_mot.T + b_mot], axis=2)
    assert out.shape == (B, T, app_output_size + mot_output_size), out.shape
    assert jnp.allclose(out, ref, atol=1e-5, rtol=1e-5), "mismatch vs reference"

    print("KERNEL_OK")
</pallas_src>

<mosaic_0001>
module attributes {stable_mosaic.version = 11 : i64} {
  func.func @_visual_encoder_kernel(%arg0: i32, %arg1: memref<16x32xf32, #tpu.memory_space<vmem>>, %arg2: memref<16x32xf32, #tpu.memory_space<vmem>>, %arg3: memref<32x128xf32, #tpu.memory_space<vmem>>, %arg4: memref<32x128xf32, #tpu.memory_space<vmem>>, %arg5: memref<1x128xf32, #tpu.memory_space<vmem>>, %arg6: memref<16x128xf32, #tpu.memory_space<vmem>>) attributes {dimension_semantics = [#tpu.dimension_semantics<parallel>], iteration_bounds = array<i64: 1>, scalar_prefetch = 0 : i64, scratch_operands = 0 : i64, tpu.core_type = #tpu.core_type<tc>, window_params = [{transform_indices = @transform_0, window_bounds = array<i64: 16, 32>}, {transform_indices = @transform_1, window_bounds = array<i64: 16, 32>}, {pipeline_mode = #tpu.pipeline_mode<synchronous>, transform_indices = @transform_2, window_bounds = array<i64: 32, 128>}, {pipeline_mode = #tpu.pipeline_mode<synchronous>, transform_indices = @transform_3, window_bounds = array<i64: 32, 128>}, {pipeline_mode = #tpu.pipeline_mode<synchronous>, transform_indices = @transform_4, window_bounds = array<i64: 1, 128>}, {transform_indices = @transform_5, window_bounds = array<i64: 16, 128>}]} {
    %c0 = arith.constant 0 : index
    %c0_0 = arith.constant 0 : index
    %0 = vector.load %arg1[%c0, %c0_0] : memref<16x32xf32, #tpu.memory_space<vmem>>, vector<16x32xf32>
    %c0_1 = arith.constant 0 : index
    %c0_2 = arith.constant 0 : index
    %1 = vector.load %arg3[%c0_1, %c0_2] : memref<32x128xf32, #tpu.memory_space<vmem>>, vector<32x128xf32>
    %cst = arith.constant dense<0.000000e+00> : vector<16x128xf32>
    %2 = tpu.matmul %0, %1, %cst {dimension_numbers = #tpu.dot_dimension_numbers<[1], [0], [0], [1], [0, 0, 1, 1], [], []>} : vector<16x32xf32>, vector<32x128xf32>, vector<16x128xf32> -> vector<16x128xf32>
    %c0_3 = arith.constant 0 : index
    %c0_4 = arith.constant 0 : index
    %3 = vector.load %arg2[%c0_3, %c0_4] : memref<16x32xf32, #tpu.memory_space<vmem>>, vector<16x32xf32>
    %c0_5 = arith.constant 0 : index
    %c0_6 = arith.constant 0 : index
    %4 = vector.load %arg4[%c0_5, %c0_6] : memref<32x128xf32, #tpu.memory_space<vmem>>, vector<32x128xf32>
    %cst_7 = arith.constant dense<0.000000e+00> : vector<16x128xf32>
    %5 = tpu.matmul %3, %4, %cst_7 {dimension_numbers = #tpu.dot_dimension_numbers<[1], [0], [0], [1], [0, 0, 1, 1], [], []>} : vector<16x32xf32>, vector<32x128xf32>, vector<16x128xf32> -> vector<16x128xf32>
    %6 = arith.addf %2, %5 : vector<16x128xf32>
    %c0_8 = arith.constant 0 : index
    %c0_9 = arith.constant 0 : index
    %7 = vector.load %arg5[%c0_8, %c0_9] : memref<1x128xf32, #tpu.memory_space<vmem>>, vector<1x128xf32>
    %8 = vector.broadcast %7 : vector<1x128xf32> to vector<16x128xf32>
    %9 = arith.addf %6, %8 : vector<16x128xf32>
    %c0_10 = arith.constant 0 : index
    %c0_11 = arith.constant 0 : index
    %10 = vector.load %arg6[%c0_10, %c0_11] : memref<16x128xf32, #tpu.memory_space<vmem>>, vector<16x128xf32>
    tpu.vector_store %arg6[%c0_10, %c0_11], %9 {strides = array<i32>} : memref<16x128xf32, #tpu.memory_space<vmem>>, vector<16x128xf32>,
    return
  }
  func.func @transform_0(%arg0: i32) -> (i32, i32) {
    %c0_i32 = arith.constant 0 : i32
    %c0_i32_0 = arith.constant 0 : i32
    return %arg0, %c0_i32 : i32, i32
  }
  func.func @transform_1(%arg0: i32) -> (i32, i32) {
    %c0_i32 = arith.constant 0 : i32
    %c0_i32_0 = arith.constant 0 : i32
    return %arg0, %c0_i32 : i32, i32
  }
  func.func @transform_2(%arg0: i32) -> (i32, i32) {
    %c0_i32 = arith.constant 0 : i32
    %c0_i32_0 = arith.constant 0 : i32
    %c0_i32_1 = arith.constant 0 : i32
    return %c0_i32, %c0_i32_0 : i32, i32
  }
  func.func @transform_3(%arg0: i32) -> (i32, i32) {
    %c0_i32 = arith.constant 0 : i32
    %c0_i32_0 = arith.constant 0 : i32
    %c0_i32_1 = arith.constant 0 : i32
    return %c0_i32, %c0_i32_0 : i32, i32
  }
  func.func @transform_4(%arg0: i32) -> (i32, i32) {
    %c0_i32 = arith.constant 0 : i32
    %c0_i32_0 = arith.constant 0 : i32
    %c0_i32_1 = arith.constant 0 : i32
    return %c0_i32, %c0_i32_0 : i32, i32
  }
  func.func @transform_5(%arg0: i32) -> (i32, i32) {
    %c0_i32 = arith.constant 0 : i32
    %c0_i32_0 = arith.constant 0 : i32
    return %arg0, %c0_i32 : i32, i32
  }
}

</mosaic_0001>

<bundles_post_ra>
// kernel: tpu_custom_call.1
= control target key start
LH: loop header
LB: loop body
LE: loop exit
PB: predicated region body
PF: predicated region fallthrough
CT: control target
= control target key end

     0   :  { %10 = vsyncpa [#allocation3], 0  ;;  %s402_s0 = inlined_call_operand.hbm [shape: f32[16,32], index: 0, kind: input, shape index: {}]   ;;  %s403_s1 = inlined_call_operand.hbm [shape: f32[16,32], index: 1, kind: input, shape index: {}]   ;;  %s404_s2 = inlined_call_operand.hbm [shape: f32[32,128], index: 2, kind: input, shape index: {}]   ;;  %s405_s3 = inlined_call_operand.hbm [shape: f32[32,128], index: 3, kind: input, shape index: {}]   ;;  %s406_s4 = inlined_call_operand.vmem [shape: f32[1,128], index: 4, kind: input, shape index: {}]   ;;  %s407_s5 = inlined_call_operand.hbm [shape: f32[16,128], index: 5, kind: output, shape index: {}]  }
   0x1   :  { %11 = vsyncpa [#allocation6], 0 }
   0x2   :  { %12 = vsyncpa [#allocation9], 0 }
   0x3   :  { %13 = vsyncpa [#allocation4], 0  ;;  %s31_s20 = sshll.u32 %s403_s1, 4  ;;  %s332_s21 = smov [#allocation5]   ;;  %s32_s20 = int_to_ptr.hbm [resolvable:$true] %s31_s20 }
   0x4   :  { %s33_s22 = sshll.u32 %s332_s21, 4  ;;  %s18_s25 = sshll.u32 %s402_s0, 4  ;;  %s34_s22 = int_to_ptr.vmem [resolvable:$true] %s33_s22  ;;  %s19_s25 = int_to_ptr.hbm [resolvable:$true] %s18_s25 }
   0x5   :  { %s333_s26 = smov 128   ;;  %s334_s27 = smov 8  }
   0x6   :  { %39 = dma.hbm_to_vmem [thread:$0]  %s32_s20, 256, %s34_s22, [#allocation6], %s333_s26, %s333_s26, %s334_s27  }
   0x7   :  { %s335_s28 = smov [#allocation2]   ;;  %s44_s1 = sshll.u32 %s404_s2, 4  ;;  %s45_s1 = int_to_ptr.hbm [resolvable:$true] %s44_s1 }
   0x8   :  { %s20_s29 = sshll.u32 %s335_s28, 4  ;;  %s57_s8 = sshll.u32 %s405_s3, 4  ;;  %s21_s29 = int_to_ptr.vmem [resolvable:$true] %s20_s29  ;;  %s58_s8 = int_to_ptr.hbm [resolvable:$true] %s57_s8 }
   0x9   :  { %26 = dma.hbm_to_vmem [thread:$0]  %s19_s25, 256, %s21_s29, [#allocation3], %s333_s26, %s333_s26, %s334_s27  }
   0xa   :  { %s336_s9 = smov [#allocation7]   ;;  %s337_s11 = smov [#allocation8]  }
   0xb   :  { %s46_s10 = sshll.u32 %s336_s9, 4  ;;  %s59_s2 = sshll.u32 %s337_s11, 4  ;;  %s47_s10 = int_to_ptr.vmem [resolvable:$true] %s46_s10  ;;  %s60_s2 = int_to_ptr.vmem [resolvable:$true] %s59_s2 }
   0xc   :  { %52 = dma.hbm_to_vmem [thread:$0]  %s45_s1, 512, %s47_s10, [#allocation6], %s333_s26, %s333_s26, %s334_s27  }
   0xd   :  { %65 = dma.hbm_to_vmem [thread:$0]  %s58_s8, 512, %s60_s2, [#allocation9], %s333_s26, %s333_s26, %s334_s27  }
   0xe   :  { %324 = dma.done.wait [#allocation3], 256  }
   0xf   :  { %325 = vsyncadd [#allocation3], 4294967040 }
  0x10   :  { %326 = dma.done.wait [#allocation6], 768  }
  0x11   :  { %327 = vsyncadd [#allocation6], 4294966528 }
  0x12   :  { %328 = dma.done.wait [#allocation9], 512  }
  0x13   :  { %329 = vsyncadd [#allocation9], 4294966784  ;;  %v95_v0 = vld [vmem:[#allocation8 + $0x18] sm:$0xff]  ;;  %v94_v2 = vld [vmem:[#allocation8 + $0x10] sm:$0xff]  ;;  %vm96_vm0 = vcmask 261120   ;;  %s338_s13 = smov [#allocation10]  }
  0x14   :  { %v89_v1 = vld [vmem:[#allocation7 + $0x18] sm:$0xff]  ;;  %188 = vmatpush.msra.mxu2 %v95_v0  ;;  %v88_v3 = vld [vmem:[#allocation7 + $0x10] sm:$0xff]  ;;  %v93_v4 = vld [vmem:[#allocation8 + $0x8] sm:$0xff]  ;;  %115 = vmatpush.msra.mxu0 %v95_v0  ;;  %s167_s14 = sshll.u32 %s338_s13, 4  ;;  %s169_s17 = sshll.u32 %s407_s5, 4  ;;  %s168_s14 = int_to_ptr.vmem [resolvable:$true] %s167_s14  ;;  %s170_s17 = int_to_ptr.hbm [resolvable:$true] %s169_s17 }
  0x15   :  { %192 = vmatpush.msra.mxu3 %v89_v1  ;;  %v87_v5 = vld [vmem:[#allocation7 + $0x8] sm:$0xff]  ;;  %144 = vmatpush.msra.mxu1 %v89_v1  ;;  %v92_v6 = vld [vmem:[#allocation8] sm:$0xff]  ;;  %v91_v8 = vld [vmem:[#allocation5 + $0x8] sm:$0xff] }
  0x16   :  { %189 = vmatpush.msra.mxu2 %v94_v2  ;;  %v86_v7 = vld [vmem:[#allocation7] sm:$0xff]  ;;  %116 = vmatpush.msra.mxu0 %v94_v2  ;;  %v85_v9 = vld [vmem:[#allocation2 + $0x8] sm:$0xff]  ;;  %v90_v10 = vld [vmem:[#allocation5] sm:$0xff] }
  0x17   :  { %193 = vmatpush.msra.mxu3 %v88_v3  ;;  %145 = vmatpush.msra.mxu1 %v88_v3  ;;  %v84_v11 = vld [vmem:[#allocation2] sm:$0xff] }
  0x18   :  { %190 = vmatpush.msra.mxu2 %v93_v4  ;;  %117 = vmatpush.msra.mxu0 %v93_v4  ;;  %v203_v12 = vld [vmem:[%s406_s4] ss:$0 sm:$0xff] }
  0x19   :  { %194 = vmatpush.msra.mxu3 %v87_v5  ;;  %146 = vmatpush.msra.mxu1 %v87_v5 }
  0x1a   :  { %191 = vmatpush.msra.mxu2 %v92_v6  ;;  %118 = vmatpush.msra.mxu0 %v92_v6 }
  0x1b   :  { %195 = vmatpush.msra.mxu3 %v86_v7  ;;  %185 = vmatmul.msk.f32.vlgmr.msra.gmra.mxu2 %vm96_vm0, %v91_v8 }
  0x1c   :  { %187 = vmatmul.msk.f32.vlgmr.msra.gmra.mxu3 %vm96_vm0, %v85_v9  ;;  %147 = vmatpush.msra.mxu1 %v86_v7 }
  0x1d   :  { %184 = vmatmul.msk.f32.vlgmr.msra.gmra.mxu0 %vm96_vm0, %v90_v10  ;;  %186 = vmatmul.msk.f32.vlgmr.msra.gmra.mxu1 %vm96_vm0, %v84_v11 }
  0x9a   :  { %v120_v13 = vpop.f32.mrf.mxu0  ;;  %v149_v14 = vpop.f32.mrf.mxu1 }
  0x9b   :  { %v150_v15 = vadd.f32 %v149_v14, %v120_v13 }
  0x9d   :  { %v159_v16 = vadd.f32 %v203_v12, %v150_v15 }
  0x9e   :  { %v123_v17 = vpop.f32.mrf.mxu2 }
  0x9f   :  { %v152_v18 = vpop.f32.mrf.mxu3  ;;  %161 = vst [vmem:[#allocation10] sm:$0xff] %v159_v16 }
  0xa0   :  { %v153_v19 = vadd.f32 %v152_v18, %v123_v17 }
  0xa2   :  { %v160_v20 = vadd.f32 %v203_v12, %v153_v19 }
  0xa4   :  { %162 = vst [vmem:[#allocation10 + $0x8] sm:$0xff] %v160_v20 }
  0xa5   :  { %175 = dma.vmem_to_hbm [thread:$0]  %s168_s14, 256, %s170_s17, [#allocation4], %s333_s26, %s333_s26, %s334_s27  }
  0xa6   :  { %330 = dma.done.wait [#allocation4], 256  }
  0xa7   :  { %331 = vsyncadd [#allocation4], 4294967040 }
  0xa8   :  { %180 = vsyncpa [#allocation3], 1 }
  0xa9   :  { %181 = vsyncpa [#allocation6], 1 }
  0xaa   :  { %182 = vsyncpa [#allocation9], 1 }
  0xab   :  { %183 = vsyncpa [#allocation4], 1 }

</bundles_post_ra>
